<compile_context>
chip_gen: v7x
topology: tpu7x:2x2x1
jax: 0.10.0
libtpu: 0.0.40
codegen_flags: <defaults>
</compile_context>

<pallas_src>
import functools

import jax
import jax.numpy as jnp
from jax.experimental import pallas as pl
from jax.experimental.pallas import tpu as pltpu


# ----------------------------------------------------------------------------
# Kernels
# ----------------------------------------------------------------------------
def _evonorm_fused_kernel(x_ref, g_ref, b_ref, o_ref, *, eps, groups, cpg):
    """One whole batch item per grid step. x_ref/o_ref: (C, HW) lane-dense."""
    C, HW = x_ref.shape
    n = cpg * HW
    inv_n = 1.0 / n
    inv_nm1 = 1.0 / max(n - 1, 1)          # unbiased (ddof=1), as torch.var

    x = x_ref[...].astype(jnp.float32)

    # Pass 1: per-channel row sums (lane reduction on the XLU), then combine
    # channels of the same group.  The combine only touches C elements.
    s_c = jnp.sum(x, axis=-1, keepdims=True)                       # (C, 1)
    if cpg == 1:                                                    # groups == C
        mean_c = s_c * inv_n
    else:
        s_g = jnp.sum(s_c.reshape(groups, cpg), axis=-1, keepdims=True)
        mean_c = jnp.broadcast_to(s_g * inv_n, (groups, cpg)).reshape(C, 1)

    # Pass 2: per-group sum of squared deviations (two-pass variance).
    d = x - mean_c
    ss_c = jnp.sum(d * d, axis=-1, keepdims=True)                   # (C, 1)
    if cpg == 1:
        var_c = ss_c * inv_nm1
    else:
        ss_g = jnp.sum(ss_c.reshape(groups, cpg), axis=-1, keepdims=True)
        var_c = jnp.broadcast_to(ss_g * inv_nm1, (groups, cpg)).reshape(C, 1)

    inv_std = jax.lax.rsqrt(var_c + eps)                            # EUP
    scale = g_ref[...].astype(jnp.float32) * inv_std                # (C, 1)
    beta = b_ref[...].astype(jnp.float32)
    o_ref[...] = (x * jax.nn.sigmoid(x) * scale + beta).astype(o_ref.dtype)


def _evonorm_group_kernel(x_ref, g_ref, b_ref, o_ref, *, eps):
    """Fallback: one (batch, group) tile per grid step. x_ref/o_ref: (cpg, HW)."""
    cpg, HW = x_ref.shape
    n = cpg * HW
    x = x_ref[...].astype(jnp.float32)
    mean = jnp.sum(x, keepdims=True) * (1.0 / n)                    # (1, 1)
    d = x - mean
    var = jnp.sum(d * d, keepdims=True) * (1.0 / max(n - 1, 1))     # (1, 1)
    inv_std = jax.lax.rsqrt(var + eps)
    scale = g_ref[...].astype(jnp.float32) * inv_std                # (cpg, 1)
    beta = b_ref[...].astype(jnp.float32)
    o_ref[...] = (x * jax.nn.sigmoid(x) * scale + beta).astype(o_ref.dtype)


# ----------------------------------------------------------------------------
# Wrapper
# ----------------------------------------------------------------------------
def evonorm2d_s0(x, gamma, beta, eps=1e-5, groups=32,
                 max_fused_tile_bytes=8 * 1024 * 1024):
    """EvoNorm2D 'S0' (efficient, affine) forward.

    x: (N, C, H, W); gamma/beta: (1, C, 1, 1).
    """
    N, C, H, W = x.shape
    groups = C if groups > C else groups          # same rule as group_std
    assert C % groups == 0, "channels must be divisible by groups"
    cpg = C // groups
    HW = H * W
    itemsize = jnp.dtype(x.dtype).itemsize

    total = N * C * HW
    cost = pl.CostEstimate(
        flops=10 * total,
        transcendentals=total,                    # sigmoid
        bytes_accessed=2 * total * itemsize + 2 * C * 4,
    )

    g2 = gamma.reshape(C, 1).astype(jnp.float32)
    b2 = beta.reshape(C, 1).astype(jnp.float32)

    fused_tile_f32 = C * HW * 4                   # f32 working copy per step
    if fused_tile_f32 <= max_fused_tile_bytes:
        # --- preferred path: grid=(N,), one lane-dense (C, HW) tile per step.
        x3 = x.reshape(N, C, HW)
        tile_io = C * HW * itemsize
        needed = 4 * tile_io + 4 * fused_tile_f32 + (2 << 20)
        vmem_limit = int(min(max(needed, 32 << 20), 48 << 20))

        kernel = functools.partial(
            _evonorm_fused_kernel, eps=float(eps), groups=groups, cpg=cpg)

        out = pl.pallas_call(
            kernel,
            out_shape=jax.ShapeDtypeStruct((N, C, HW), x.dtype),
            grid=(N,),
            in_specs=[
                pl.BlockSpec((None, C, HW), lambda n: (n, 0, 0)),
                pl.BlockSpec((C, 1), lambda n: (0, 0)),      # resident
                pl.BlockSpec((C, 1), lambda n: (0, 0)),      # resident
            ],
            out_specs=pl.BlockSpec((None, C, HW), lambda n: (n, 0, 0)),
            compiler_params=pltpu.CompilerParams(
                dimension_semantics=("parallel",),
                vmem_limit_bytes=vmem_limit),
            cost_estimate=cost,
        )(x3, g2, b2)
        return out.reshape(N, C, H, W)

    # --- fallback path: grid=(groups, N), lane-dense (cpg, HW) tiles.
    # gamma/beta block index depends only on the outer (group) axis, so they
    # are fetched once per group, not once per step.
    # TODO(synk): for cpg*H*W tiles exceeding VMEM, add a split reduction along
    # H*W with running sum / sum-of-squared-deviation accumulators.
    x4 = x.reshape(N, groups, cpg, HW)
    g3 = g2.reshape(groups, cpg, 1)
    b3 = b2.reshape(groups, cpg, 1)

    tile_io = cpg * HW * itemsize
    needed = 4 * tile_io + 4 * cpg * HW * 4 + (2 << 20)
    vmem_limit = int(min(max(needed, 32 << 20), 48 << 20))

    kernel = functools.partial(_evonorm_group_kernel, eps=float(eps))

    out = pl.pallas_call(
        kernel,
        out_shape=jax.ShapeDtypeStruct((N, groups, cpg, HW), x.dtype),
        grid=(groups, N),
        in_specs=[
            pl.BlockSpec((None, None, cpg, HW), lambda g, n: (n, g, 0, 0)),
            pl.BlockSpec((None, cpg, 1), lambda g, n: (g, 0, 0)),
            pl.BlockSpec((None, cpg, 1), lambda g, n: (g, 0, 0)),
        ],
        out_specs=pl.BlockSpec((None, None, cpg, HW), lambda g, n: (n, g, 0, 0)),
        compiler_params=pltpu.CompilerParams(
            dimension_semantics=("parallel", "parallel"),
            vmem_limit_bytes=vmem_limit),
        cost_estimate=cost,
    )(x4, g3, b3)
    return out.reshape(N, C, H, W)


# ----------------------------------------------------------------------------
# Pure-JAX reference (matches the PyTorch module's S0/efficient forward)
# ----------------------------------------------------------------------------
def _reference(x, gamma, beta, eps=1e-5, groups=32):
    N, C, H, W = x.shape
    groups = C if groups > C else groups
    xg = x.reshape(N, groups, C // groups, H, W)
    var = jnp.var(xg, axis=(2, 3, 4), keepdims=True, ddof=1)   # unbiased
    std = jnp.broadcast_to(jnp.sqrt(var + eps), xg.shape).reshape(N, C, H, W)
    num = x * jax.nn.sigmoid(x)
    return num / std * gamma + beta


if __name__ == "__main__":
    key = jax.random.PRNGKey(0)
    kx, kg, kb = jax.random.split(key, 3)
    N, C, H, W = 2, 4, 16, 16
    x = jax.random.normal(kx, (N, C, H, W), dtype=jnp.float32)

    # Learnable affine params (module inits gamma=1, beta=0; perturb to make
    # the affine path non-trivial while staying deterministic).
    gamma = 1.0 + 0.1 * jax.random.normal(kg, (1, C, 1, 1), dtype=jnp.float32)
    beta = 0.1 * jax.random.normal(kb, (1, C, 1, 1), dtype=jnp.float32)
    eps = 1e-5

    ref = _reference(x, gamma, beta, eps=eps, groups=32)

    # Preferred fused path (one batch item per grid step).
    out = evonorm2d_s0(x, gamma, beta, eps=eps, groups=32)
    out = jax.block_until_ready(out)
    assert out.shape == (N, C, H, W)
    assert jnp.allclose(out, ref, atol=2e-5, rtol=2e-5), \
        float(jnp.max(jnp.abs(out - ref)))

    # Also exercise the per-(batch, group) fallback path used for huge tiles.
    out_fb = evonorm2d_s0(x, gamma, beta, eps=eps, groups=32,
                          max_fused_tile_bytes=0)
    out_fb = jax.block_until_ready(out_fb)
    assert jnp.allclose(out_fb, ref, atol=2e-5, rtol=2e-5), \
        float(jnp.max(jnp.abs(out_fb - ref)))

    print("KERNEL_OK")
</pallas_src>

<mosaic_0001>
module attributes {stable_mosaic.version = 11 : i64} {
  func.func @_evonorm_fused_kernel(%arg0: i32, %arg1: memref<1x4x256xf32, #tpu.memory_space<vmem>>, %arg2: memref<4x1xf32, #tpu.memory_space<vmem>>, %arg3: memref<4x1xf32, #tpu.memory_space<vmem>>, %arg4: memref<1x4x256xf32, #tpu.memory_space<vmem>>) attributes {dimension_semantics = [#tpu.dimension_semantics<parallel>], iteration_bounds = array<i64: 2>, scalar_prefetch = 0 : i64, scratch_operands = 0 : i64, tpu.core_type = #tpu.core_type<tc>, window_params = [{transform_indices = @transform_0, window_bounds = array<i64: 1, 4, 256>}, {pipeline_mode = #tpu.pipeline_mode<synchronous>, transform_indices = @transform_1, window_bounds = array<i64: 4, 1>}, {pipeline_mode = #tpu.pipeline_mode<synchronous>, transform_indices = @transform_2, window_bounds = array<i64: 4, 1>}, {transform_indices = @transform_3, window_bounds = array<i64: 1, 4, 256>}]} {
    %c0 = arith.constant 0 : index
    %c0_0 = arith.constant 0 : index
    %c0_1 = arith.constant 0 : index
    %0 = vector.load %arg1[%c0, %c0_0, %c0_1] : memref<1x4x256xf32, #tpu.memory_space<vmem>>, vector<1x4x256xf32>
    %1 = vector.shape_cast %0 : vector<1x4x256xf32> to vector<4x256xf32>
    %cst = arith.constant dense<0.000000e+00> : vector<4xf32>
    %2 = vector.multi_reduction <add>, %1, %cst [1] : vector<4x256xf32> to vector<4xf32>
    %3 = vector.shape_cast %2 : vector<4xf32> to vector<4x1xf32>
    %cst_2 = arith.constant 3.906250e-03 : f32
    %4 = vector.broadcast %cst_2 : f32 to vector<4x1xf32>
    %5 = arith.mulf %3, %4 : vector<4x1xf32>
    %6 = vector.broadcast %5 : vector<4x1xf32> to vector<4x256xf32>
    %7 = arith.subf %1, %6 : vector<4x256xf32>
    %8 = arith.mulf %7, %7 : vector<4x256xf32>
    %cst_3 = arith.constant dense<0.000000e+00> : vector<4xf32>
    %9 = vector.multi_reduction <add>, %8, %cst_3 [1] : vector<4x256xf32> to vector<4xf32>
    %10 = vector.shape_cast %9 : vector<4xf32> to vector<4x1xf32>
    %cst_4 = arith.constant 0.00392156886 : f32
    %11 = vector.broadcast %cst_4 : f32 to vector<4x1xf32>
    %12 = arith.mulf %10, %11 : vector<4x1xf32>
    %cst_5 = arith.constant 9.99999974E-6 : f32
    %13 = vector.broadcast %cst_5 : f32 to vector<4x1xf32>
    %14 = arith.addf %12, %13 : vector<4x1xf32>
    %15 = math.rsqrt %14 : vector<4x1xf32>
    %c0_6 = arith.constant 0 : index
    %c0_7 = arith.constant 0 : index
    %16 = vector.load %arg2[%c0_6, %c0_7] : memref<4x1xf32, #tpu.memory_space<vmem>>, vector<4x1xf32>
    %17 = arith.mulf %16, %15 : vector<4x1xf32>
    %c0_8 = arith.constant 0 : index
    %c0_9 = arith.constant 0 : index
    %18 = vector.load %arg3[%c0_8, %c0_9] : memref<4x1xf32, #tpu.memory_space<vmem>>, vector<4x1xf32>
    %19 = arith.negf %1 : vector<4x256xf32>
    %20 = math.exp %19 : vector<4x256xf32>
    %cst_10 = arith.constant 1.000000e+00 : f32
    %21 = vector.broadcast %cst_10 : f32 to vector<4x256xf32>
    %22 = arith.addf %21, %20 : vector<4x256xf32>
    %23 = arith.divf %21, %22 : vector<4x256xf32>
    %24 = arith.mulf %1, %23 : vector<4x256xf32>
    %25 = vector.broadcast %17 : vector<4x1xf32> to vector<4x256xf32>
    %26 = arith.mulf %24, %25 : vector<4x256xf32>
    %27 = vector.broadcast %18 : vector<4x1xf32> to vector<4x256xf32>
    %28 = arith.addf %26, %27 : vector<4x256xf32>
    %c0_11 = arith.constant 0 : index
    %c0_12 = arith.constant 0 : index
    %c0_13 = arith.constant 0 : index
    %29 = vector.load %arg4[%c0_11, %c0_12, %c0_13] : memref<1x4x256xf32, #tpu.memory_space<vmem>>, vector<1x4x256xf32>
    %30 = vector.shape_cast %29 : vector<1x4x256xf32> to vector<4x256xf32>
    %31 = vector.shape_cast %28 : vector<4x256xf32> to vector<1x4x256xf32>
    tpu.vector_store %arg4[%c0_11, %c0_12, %c0_13], %31 {strides = array<i32>} : memref<1x4x256xf32, #tpu.memory_space<vmem>>, vector<1x4x256xf32>,
    return
  }
  func.func @transform_0(%arg0: i32) -> (i32, i32, i32) {
    %c0_i32 = arith.constant 0 : i32
    %c0_i32_0 = arith.constant 0 : i32
    %c0_i32_1 = arith.constant 0 : i32
    return %arg0, %c0_i32, %c0_i32_0 : i32, i32, i32
  }
  func.func @transform_1(%arg0: i32) -> (i32, i32) {
    %c0_i32 = arith.constant 0 : i32
    %c0_i32_0 = arith.constant 0 : i32
    %c0_i32_1 = arith.constant 0 : i32
    return %c0_i32, %c0_i32_0 : i32, i32
  }
  func.func @transform_2(%arg0: i32) -> (i32, i32) {
    %c0_i32 = arith.constant 0 : i32
    %c0_i32_0 = arith.constant 0 : i32
    %c0_i32_1 = arith.constant 0 : i32
    return %c0_i32, %c0_i32_0 : i32, i32
  }
  func.func @transform_3(%arg0: i32) -> (i32, i32, i32) {
    %c0_i32 = arith.constant 0 : i32
    %c0_i32_0 = arith.constant 0 : i32
    %c0_i32_1 = arith.constant 0 : i32
    return %arg0, %c0_i32, %c0_i32_0 : i32, i32, i32
  }
}

</mosaic_0001>

<bundles_post_ra>
// kernel: tpu_custom_call.1
= control target key start
LH: loop header
LB: loop body
LE: loop exit
PB: predicated region body
PF: predicated region fallthrough
CT: control target
= control target key end

     0   :  { %8 = vsyncpa [#allocation3], 0  ;;  %s713_s0 = inlined_call_operand.hbm [shape: f32[2,4,256], index: 0, kind: input, shape index: {}]   ;;  %s714_s1 = inlined_call_operand.vmem [shape: f32[4,1], index: 1, kind: input, shape index: {}]   ;;  %s715_s2 = inlined_call_operand.vmem [shape: f32[4,1], index: 2, kind: input, shape index: {}]   ;;  %s716_s3 = inlined_call_operand.hbm [shape: f32[2,4,256], index: 3, kind: output, shape index: {}]  }
   0x1   :  { %10 = vsyncpa [#allocation3 + $0x1], 0 }
   0x2   :  { %11 = vsyncpa [#allocation4], 0 }
   0x3   :  { %13 = vsyncpa [#allocation4 + $0x1], 0  ;;  %s538_s12 = smov 0   ;;  %s540_s13 = smov 0  }
   0x4   :  { %s542_s14 = smov 0   ;;  %s544_s15 = smov 0  }
   0x5 LB: > { %s559_s16 = sadd.s32 4294967295, %s512_s15   ;;  %s342_s17 = sadd.s32 4294967294, %s512_s15   ;;  %s512_s15 = sphi %s544_s15, %s731_s15   ;;  %s508_s14 = sphi %s542_s14, %s730_s14   ;;  %s504_s13 = sphi %s540_s13, %s729_s13   ;;  %s500_s12 = sphi %s538_s12, %s728_s12  }
   0x6   : > { %s563_s18 = sadd.s32 1, %s512_s15   ;;  %s26_s19 = sadd.s32 1, %s508_s14 }
   0x7   : > { %s23_s20 = ssub.s32 %s512_s15, %s563_s18  ;;  %p33_p0 = scmp.ne.s32.totalorder %s508_s14, %s504_s13 }
   0x8   : > { %p24_p1 = scmp.eq.s32.totalorder %s23_s20, 0  ;;  %p34_p2 = scmp.eq.s32.totalorder %s512_s15, 0 }
   0x9   : > { %p39_p3 = scmp.ne.s32.totalorder %s504_s13, %s500_s12  ;;  %p40_p4 = scmp.eq.s32.totalorder %s559_s16, 0 }
   0xa   : > { %s575_s21 = scalar_select %p24_p1, %s508_s14, %s26_s19  }
   0xb   : > { %p577_p5 = por %p34_p2, %p33_p0  ;;  %p581_p6 = por %p40_p4, %p39_p3 }
   0xc   : > { %p105_p7 = scmp.eq.s32.totalorder %s559_s16, 1  ;;  %p111_p8 = scmp.eq.s32.totalorder %s342_s17, 1 }
   0xd   : > { %p371_p10 = scmp.lt.s32.totalorder %s512_s15, 2  ;;  %s137_s26 = sand.u32 1, %s508_s14  }
   0xe   : > { %p588_p11 = por %p105_p7, %p33_p0  ;;  %p592_p12 = por %p111_p8, %p39_p3 }
   0xf   : > { %s357_s27 = sshll.u32 %s512_s15, 7  ;;  %s345_s28 = sshll.u32 %s137_s26, 3 }
  0x10   : > { %s720_s24 = scalar_select %p588_p11, 1, 0 }
  0x11   : > { %s721_s25 = scalar_select %p592_p12, 1, 0 }
  0x12   : > { %s601_s4 = scalar_lea.hbm %s713_s0, %s357_s27  ;;  %s141_s5 = scalar_lea.vmem [#allocation2], %s345_s28 }
  0x13   : > { %s149_s6 = sshll.u32 %s141_s5, 4  ;;  %p605_p13 = pnand %p371_p10, %p577_p5  ;;  %s609_s6 = int_to_ptr.vmem [resolvable:$true] %s149_s6 }
  0x14   : > { %s138_s8 = scalar_lea.sflag [#allocation3], %s137_s26  ;;  %s416_s9 = scalar_lea.hbm %s601_s4, 128 }
  0x15   : > { %p417_p2 = scmp.ne.s32.totalorder %s601_s4, %s416_s9  ;;  %p418_p3 = pneg %p605_p13 }
  0x16   : > { %s421_s17 = scalar_lea.hbm %s713_s0, 256  ;;  %p422_p5 = scmp.lt.u32.totalorder %s601_s4, %s713_s0 }
  0x17   : > { %p419_p4 = pnand %p418_p3, %p417_p2  ;;  %p423_p8 = scmp.lt.u32.totalorder %s421_s17, %s416_s9 }
  0x18   : > { %p425_p9 = scmp.lt.u32.totalorder %s416_s9, %s601_s4 }
  0x19   : > { %p420_p7 = pneg %p419_p4  ;;  %p424_p10 = por %p423_p8, %p422_p5 }
  0x1b   : > { %p426_p0 = por %p425_p9, %p424_p10 }
  0x1d   : > { %p427_p1 = pnand %p426_p0, %p420_p7 }
  0x1f   : > { %430 = shalt.err (!%p427_p1)
}
  0x20   : > { %s431_s22 = scalar_lea.vmem %s609_s6, 128  ;;  %s514_s26 = smov [#allocation2]  }
  0x21   : > { %p432_p2 = scmp.ne.s32.totalorder %s609_s6, %s431_s22  ;;  %s436_s27 = sshll.u32 %s514_s26, 4  ;;  %s437_s27 = int_to_ptr.vmem [resolvable:$false] %s436_s27 }
  0x22   : > { %s438_s28 = scalar_lea.vmem %s437_s27, 256  ;;  %p439_p11 = scmp.lt.s32.totalorder %s609_s6, %s437_s27 }
  0x23   : > { %p434_p4 = pnand %p432_p2, %p418_p3  ;;  %p440_p5 = scmp.lt.s32.totalorder %s438_s28, %s431_s22 }
  0x25   : > { %p435_p12 = pneg %p434_p4  ;;  %p441_p8 = por %p440_p5, %p439_p11 }
  0x27   : > { %p442_p9 = pnand %p441_p8, %p435_p12 }
  0x29   : > { %445 = shalt.err (!%p442_p9)
}
  0x2a   : > { %366 = dma.hbm_to_vmem [thread:$0]  (!%p605_p13), %s601_s4, 128, %s609_s6, %s138_s8  }
  0x2b   : > { %p723_p0 = scmp.lt.s32.totalorder %s512_s15, 3  ;;  %p724_p1 = scmp.ge.s32.totalorder %s512_s15, 1 }
  0x2d   : > { %p155_p3 = pnand %p724_p1, %p723_p0 }
  0x2e   : > { %s643_s29 = sand.u32 (!%p155_p3), 1, %s504_s13  }
  0x2f   : > { %158 = sbr.rel (%p155_p3) target bundleno = 525 (0x20d), region = 32  ;;  %s349_s30 = sshll.u32 (!%p155_p3), %s643_s29, 3 }
  0x30   : > { %s161_s5 = scalar_lea.sflag (!%p155_p3), [#allocation3], %s643_s29  ;;  %s164_s7 = scalar_lea.vmem (!%p155_p3), [#allocation2], %s349_s30 }
  0x36   : > { %491 = dma.done.wait (%p581_p6), %s161_s5, 128  }
  0x37   : > { %493 = vsyncadd (%p581_p6), %s161_s5, 4294967168  ;;  %vm191_vm0 = vcmask 1043456   ;;  %v187_v0 = vld [vmem:[%s164_s7] sm:$0xff]  ;;  %v515_v5 = vmov 839922192   ;;  %v202_v7 = vlaneseq  ;;  %v516_v20 = vmov 0  }
  0x38   : > { %v189_v1 = vcombine.high %v187_v0, %v187_v0  ;;  %v192_v2 = vsel %vm191_vm0, %v187_v0, 0.0  ;;  %v200_v6 = vunpack.c.l.s4 %v515_v5  ;;  %407 = vset.pattern.permute.xlu1 %v516_v20  ;;  %408 = vset.pattern.permute.xlu0 %v516_v20  ;;  %v220_v24 = vld [vmem:[%s714_s1] sm:$0xf]  ;;  %v351_v28 = vmul.f32 -1.442695, %v187_v0  ;;  %s358_s9 = sshll.u32 %s559_s16, 7 }
  0x39   : > { %v203_v9 = vshrl.u32 %v202_v7, 7  ;;  %v222_v27 = vld [vmem:[%s715_s2] sm:$0xf]  ;;  %s186_s10 = scalar_lea.vmem [#allocation5], %s349_s30  ;;  %s669_s20 = scalar_lea.hbm %s716_s3, %s358_s9 }
  0x3a   : > { %v193_v3 = vsel %vm191_vm0, %v189_v1, 0.0  ;;  %v201_v8 = vunpack.c.0.s8 %v200_v6  ;;  %s272_s11 = sshll.u32 %s186_s10, 4  ;;  %s258_s22 = scalar_lea.sflag [#allocation4], %s643_s29  ;;  %s671_s11 = int_to_ptr.vmem [resolvable:$true] %s272_s11 }
  0x3b   : > { %v194_v4 = vadd.f32 %v193_v3, %v192_v2  ;;  %s446_s26 = scalar_lea.vmem %s671_s11, 128  ;;  %p725_p11 = scmp.ne.s32.totalorder %s720_s24, 0 }
  0x3c   : > { %v204_v10 = vsub.s32 %v201_v8, %v203_v9  ;;  %p447_p6 = scmp.ne.s32.totalorder %s671_s11, %s446_s26  ;;  %s517_s16 = smov [#allocation5]  }
  0x3d   : > { %195 = vadd.xlane.f32.xlu0 %v194_v4  ;;  %s450_s27 = sshll.u32 %s517_s16, 4  ;;  %s451_s27 = int_to_ptr.vmem [resolvable:$false] %s450_s27 }
  0x3e   : > { %p448_p12 = pnand %p447_p6, %p725_p11  ;;  %s452_s28 = scalar_lea.vmem %s451_s27, 256 }
  0x3f   : > { %p453_p7 = scmp.lt.s32.totalorder %s671_s11, %s451_s27  ;;  %p454_p10 = scmp.lt.s32.totalorder %s452_s28, %s446_s26 }
  0x40   : > { %p449_p13 = pneg %p448_p12 }
  0x41   : > { %p455_p2 = por %p454_p10, %p453_p7 }
  0x43   : > { %p456_p4 = pnand %p455_p2, %p449_p13 }
  0xca   : > { %v196_v11 = vpop.xlane.xlu0 %195 }
  0xcb   : > { %v197_v12 = vmul.f32 0.00390625, %v196_v11 }
  0xcd   : > { %v205_v13 = vrot.slane %v197_v12, %v204_v10 }
  0xcf   : > { %v207_v14 = vsub.f32 %v187_v0, %v205_v13 }
  0xd1   : > { %v208_v15 = vmul.f32 %v207_v14, %v207_v14 }
  0xd3   : > { %v210_v16 = vcombine.high %v208_v15, %v208_v15  ;;  %v212_v17 = vsel %vm191_vm0, %v208_v15, 0.0 }
  0xd5   : > { %v213_v18 = vsel %vm191_vm0, %v210_v16, 0.0 }
  0xd6   : > { %v214_v19 = vadd.f32 %v213_v18, %v212_v17 }
  0xd8   : > { %215 = vadd.xlane.f32.xlu0 %v214_v19 }
 0x165   : > { %v216_v21 = vpop.xlane.xlu0 %215 }
 0x166   : > { %v217_v22 = vmul.f32 0.003921569, %v216_v21 }
 0x168   : > { %v218_v23 = vadd.f32 1e-05, %v217_v22 }
 0x16a   : > { %410 = vrsqrt.f32 %v218_v23 }
 0x16b   : > { %412 = vpow2.f32 %v351_v28 }
 0x174   : > { %v411_v25 = vpop.eup %410 }
 0x175   : > { %v221_v26 = vmul.f32 %v411_v25, %v220_v24  ;;  %v413_v29 = vpop.eup %412 }
 0x176   : > { %v226_v30 = vadd.f32 1.0, %v413_v29 }
 0x177   : > { %232 = vperm.xlu1 %407, %v221_v26  }
 0x178   : > { %414 = vrcp.f32 %v226_v30 }
 0x17b   : > { %245 = vperm.xlu1 %407, %v222_v27  }
 0x182   : > { %v415_v31 = vpop.eup %414 }
 0x183   : > { %v229_v33 = vmul.f32 %v415_v31, %v187_v0 }
 0x1f6   : > { %v233_v32 = vpop.permute.xlu1 %232 }
 0x1f7   : > { %v240_v34 = vrot.slane %v233_v32, %v204_v10 }
 0x1f9   : > { %v242_v36 = vmul.f32 %v240_v34, %v229_v33 }
 0x1fa   : > { %v246_v35 = vpop.permute.xlu1 %245 }
 0x1fb   : > { %v253_v37 = vrot.slane %v246_v35, %v204_v10 }
 0x1fd   : > { %v255_v38 = vadd.f32 %v253_v37, %v242_v36 }
 0x1ff   : > { %256 = vst [vmem:[%s186_s10] sm:$0xff] %v255_v38 }
 0x200   : > { %459 = shalt.err (!%p456_p4)
}
 0x201   : > { %s460_s29 = scalar_lea.hbm %s669_s20, 128  ;;  %s464_s7 = scalar_lea.hbm %s716_s3, 256 }
 0x202   : > { %p461_p5 = scmp.ne.s32.totalorder %s669_s20, %s460_s29  ;;  %p465_p0 = scmp.lt.u32.totalorder %s669_s20, %s716_s3 }
 0x203   : > { %p466_p1 = scmp.lt.u32.totalorder %s464_s7, %s460_s29  ;;  %p468_p6 = scmp.lt.u32.totalorder %s460_s29, %s669_s20 }
 0x204   : > { %p462_p8 = pnand %p461_p5, %p725_p11 }
 0x205   : > { %p467_p3 = por %p466_p1, %p465_p0 }
 0x206   : > { %p463_p9 = pneg %p462_p8 }
 0x207   : > { %p469_p12 = por %p468_p6, %p467_p3 }
 0x209   : > { %p470_p13 = pnand %p469_p12, %p463_p9 }
 0x20b   : > { %473 = shalt.err (!%p470_p13)
}
 0x20c   : > { %361 = dma.vmem_to_hbm [thread:$0]  (%p725_p11), %s671_s11, 128, %s669_s20, %s258_s22  }
 0x20d PF: > { %s284_s6 = sand.u32 1, %s500_s12   ;;  %p726_p7 = scmp.ne.s32.totalorder %s721_s25, 0 }
 0x20e   : > { %p727_p10 = scmp.ge.s32.totalorder %s512_s15, 2  ;;  %s285_s8 = scalar_lea.sflag [#allocation4], %s284_s6 }
 0x210   : > { %p368_p2 = pnand %p727_p10, %p726_p7 }
 0x212   : > { %495 = dma.done.wait (!%p368_p2), %s285_s8, 128  }
 0x213   : > { %497 = vsyncadd (!%p368_p2), %s285_s8, 4294967168  ;;  %p16_p4 = scmp.ge.s32.totalorder %s563_s18, 4   ;;  %s728_s12 = smov %s504_s13 }
 0x214   : > { %s729_s13 = smov %s508_s14  ;;  %s730_s14 = smov %s575_s21 }
 0x215   : > { %s731_s15 = smov %s563_s18  ;;  %18 = sbr.rel (!%p16_p4) target bundleno = 5 (0x5), region = 77 }
 0x21c   :  { %290 = vsyncpa [#allocation3], 1 }
 0x21d   :  { %292 = vsyncpa [#allocation3 + $0x1], 1 }
 0x21e   :  { %293 = vsyncpa [#allocation4], 1 }
 0x21f   :  { %295 = vsyncpa [#allocation4 + $0x1], 1 }

</bundles_post_ra>
